<compile_context>
chip_gen: v6e
topology: v6e:2x2x1
jax: 0.10.0
libtpu: 0.0.40
codegen_flags: <defaults>
</compile_context>

<pallas_src>
import functools

import jax
import jax.numpy as jnp
from jax.experimental import pallas as pl
from jax.experimental.pallas import tpu as pltpu


def _ca_kernel(x_ref, w1t_ref, b1_ref, w2t_ref, b2_ref, o_ref, acc_ref, *,
               inv_hw):
    # x_ref:   (TB, C, THW)   input chunk
    # w1t_ref: (C, Cr)        first 1x1-conv weight, pre-transposed
    # b1_ref:  (1, Cr)
    # w2t_ref: (Cr, C)        second 1x1-conv weight, pre-transposed
    # b2_ref:  (1, C)
    # o_ref:   (TB, C)        attention weights (sigmoid output)
    # acc_ref: (TB, C) f32    running spatial sum (VMEM scratch)
    k = pl.program_id(1)

    @pl.when(k == 0)
    def _():
        acc_ref[...] = jnp.zeros_like(acc_ref)

    # Partial spatial sum, accumulated in f32 (no full-block f32 temp).
    acc_ref[...] += jnp.sum(x_ref[...], axis=-1, dtype=jnp.float32)

    @pl.when(k == pl.num_programs(1) - 1)
    def _():
        pooled = acc_ref[...] * inv_hw                           # (TB, C) f32
        h = jnp.dot(pooled, w1t_ref[...],
                    preferred_element_type=jnp.float32)
        h = jnp.maximum(h + b1_ref[...].astype(jnp.float32), 0.0)   # ReLU
        y = jnp.dot(h, w2t_ref[...],
                    preferred_element_type=jnp.float32)
        y = y + b2_ref[...].astype(jnp.float32)
        o_ref[...] = jax.nn.sigmoid(y).astype(o_ref.dtype)          # Sigmoid


def _pick_tb(n):
    """Batch tile: full batch if small, else a multiple of 8 dividing N."""
    if n <= 32:
        return n
    for cand in (32, 24, 16, 8):
        if n % cand == 0:
            return cand
    return n  # fallback: whole batch in one block (block dim == full dim)


def _pick_thw(hw, tb, c, itemsize, budget_bytes=4 << 20):
    """Spatial tile: largest multiple of 128 dividing HW within a VMEM budget."""
    if hw % 128 != 0:
        return hw          # small / irregular spatial size: whole plane per step
    best = 128
    t = 128
    while t <= hw:
        if hw % t == 0 and tb * c * t * itemsize <= budget_bytes:
            best = t
        t += 128
    return best


def ca_layer(x, w1, b1, w2, b2, *, tb=None, thw=None):
    """CALayer squeeze branch.  x: (N, C, H, W) NCHW.  Returns (N, C, 1, 1)."""
    n, c, h, w = x.shape
    cr = w1.shape[0]                    # C // 8
    hw = h * w

    tb = _pick_tb(n) if tb is None else tb
    thw = _pick_thw(hw, tb, c, x.dtype.itemsize) if thw is None else thw
    assert n % tb == 0 and hw % thw == 0

    x_flat = x.reshape(n, c, hw)
    # Pre-transpose loop-invariant weights in the wrapper (free layout
    # plumbing) so the kernel issues plain matmuls with no per-step transpose.
    w1t = w1.T                          # (C, Cr)
    w2t = w2.T                          # (Cr, C)
    b1_2d = b1.reshape(1, cr)
    b2_2d = b2.reshape(1, c)

    kernel = functools.partial(_ca_kernel, inv_hw=1.0 / hw)

    bytes_accessed = (x_flat.size * x_flat.dtype.itemsize
                      + w1t.size * w1t.dtype.itemsize
                      + w2t.size * w2t.dtype.itemsize
                      + (cr + c) * b1.dtype.itemsize
                      + n * c * x.dtype.itemsize)
    cost = pl.CostEstimate(
        flops=n * c * hw + 2 * n * c * cr * 2,   # pool adds + two 1x1 matmuls
        transcendentals=n * c,                   # sigmoid
        bytes_accessed=bytes_accessed)

    out = pl.pallas_call(
        kernel,
        out_shape=jax.ShapeDtypeStruct((n, c), x.dtype),
        grid_spec=pltpu.PrefetchScalarGridSpec(
            num_scalar_prefetch=0,
            grid=(n // tb, hw // thw),
            in_specs=[
                pl.BlockSpec((tb, c, thw), lambda i, k: (i, 0, k)),
                pl.BlockSpec((c, cr), lambda i, k: (0, 0)),
                pl.BlockSpec((1, cr), lambda i, k: (0, 0)),
                pl.BlockSpec((cr, c), lambda i, k: (0, 0)),
                pl.BlockSpec((1, c), lambda i, k: (0, 0)),
            ],
            out_specs=pl.BlockSpec((tb, c), lambda i, k: (i, 0)),
            scratch_shapes=[pltpu.VMEM((tb, c), jnp.float32)],
        ),
        compiler_params=pltpu.CompilerParams(
            dimension_semantics=("parallel", "arbitrary"),
            vmem_limit_bytes=32 * 1024 * 1024),
        cost_estimate=cost,
    )(x_flat, w1t, b1_2d, w2t, b2_2d)

    return out.reshape(n, c, 1, 1)


def init_params(key, num_fea):
    """Deterministic parameter init matching nn.Conv2d shapes (1x1 kernels)."""
    k1, k2, k3, k4 = jax.random.split(key, 4)
    cr = num_fea // 8
    # Conv2d(num_fea, num_fea//8, 1): weight (cr, num_fea, 1, 1) -> (cr, num_fea)
    w1 = jax.random.normal(k1, (cr, num_fea), jnp.float32) * 0.1
    b1 = jax.random.normal(k2, (cr,), jnp.float32) * 0.1
    # Conv2d(num_fea//8, num_fea, 1): weight (num_fea, cr, 1, 1) -> (num_fea, cr)
    w2 = jax.random.normal(k3, (num_fea, cr), jnp.float32) * 0.1
    b2 = jax.random.normal(k4, (num_fea,), jnp.float32) * 0.1
    return w1, b1, w2, b2


def ca_layer_ref(x, w1, b1, w2, b2):
    """Pure-JAX reference for correctness check."""
    pooled = jnp.mean(x.astype(jnp.float32), axis=(2, 3))        # (N, C)
    h = jnp.maximum(pooled @ w1.T + b1, 0.0)                     # (N, C//8)
    y = jax.nn.sigmoid(h @ w2.T + b2)                            # (N, C)
    return y[:, :, None, None].astype(x.dtype)


if __name__ == "__main__":
    key = jax.random.PRNGKey(0)
    kx, kp = jax.random.split(key)

    N, C, H, W = 2, 16, 16, 16          # num_fea = 16 -> reduced channels = 2
    x = jax.random.normal(kx, (N, C, H, W), jnp.float32)
    w1, b1, w2, b2 = init_params(kp, C)

    # Force a 2-step spatial reduction (THW=128 over HW=256) so the batched +
    # tiled accumulator path is exercised even at this toy shape.
    out = ca_layer(x, w1, b1, w2, b2, tb=N, thw=128)
    out = jax.block_until_ready(out)

    ref = ca_layer_ref(x, w1, b1, w2, b2)
    assert out.shape == (N, C, 1, 1)
    assert jnp.allclose(out, ref, atol=1e-5, rtol=1e-5), "mismatch vs reference"

    print("KERNEL_OK")
</pallas_src>

<mosaic_0001>
module attributes {stable_mosaic.version = 11 : i64} {
  func.func @_ca_kernel(%arg0: i32, %arg1: i32, %arg2: memref<2x16x128xf32, #tpu.memory_space<vmem>>, %arg3: memref<16x2xf32, #tpu.memory_space<vmem>>, %arg4: memref<1x2xf32, #tpu.memory_space<vmem>>, %arg5: memref<2x16xf32, #tpu.memory_space<vmem>>, %arg6: memref<1x16xf32, #tpu.memory_space<vmem>>, %arg7: memref<2x16xf32, #tpu.memory_space<vmem>>, %arg8: memref<2x16xf32, #tpu.memory_space<vmem>>) attributes {dimension_semantics = [#tpu.dimension_semantics<parallel>, #tpu.dimension_semantics<arbitrary>], iteration_bounds = array<i64: 1, 2>, scalar_prefetch = 0 : i64, scratch_operands = 1 : i64, tpu.core_type = #tpu.core_type<tc>, window_params = [{transform_indices = @transform_0, window_bounds = array<i64: 2, 16, 128>}, {pipeline_mode = #tpu.pipeline_mode<synchronous>, transform_indices = @transform_1, window_bounds = array<i64: 16, 2>}, {pipeline_mode = #tpu.pipeline_mode<synchronous>, transform_indices = @transform_2, window_bounds = array<i64: 1, 2>}, {pipeline_mode = #tpu.pipeline_mode<synchronous>, transform_indices = @transform_3, window_bounds = array<i64: 2, 16>}, {pipeline_mode = #tpu.pipeline_mode<synchronous>, transform_indices = @transform_4, window_bounds = array<i64: 1, 16>}, {transform_indices = @transform_5, window_bounds = array<i64: 2, 16>}]} {
    %c0_i32 = arith.constant 0 : i32
    %0 = arith.cmpi eq, %arg1, %c0_i32 : i32
    %1 = arith.extui %0 : i1 to i32
    %c0_i32_0 = arith.constant 0 : i32
    %2 = arith.cmpi ne, %1, %c0_i32_0 : i32
    scf.if %2 {
      %cst_8 = arith.constant 0.000000e+00 : f32
      %11 = vector.broadcast %cst_8 : f32 to vector<2x16xf32>
      %c0_9 = arith.constant 0 : index
      %c0_10 = arith.constant 0 : index
      %12 = vector.load %arg8[%c0_9, %c0_10] : memref<2x16xf32, #tpu.memory_space<vmem>>, vector<2x16xf32>
      tpu.vector_store %arg8[%c0_9, %c0_10], %11 {strides = array<i32>} : memref<2x16xf32, #tpu.memory_space<vmem>>, vector<2x16xf32>,
    } else {
    }
    %c0 = arith.constant 0 : index
    %c0_1 = arith.constant 0 : index
    %3 = vector.load %arg8[%c0, %c0_1] : memref<2x16xf32, #tpu.memory_space<vmem>>, vector<2x16xf32>
    %c0_2 = arith.constant 0 : index
    %c0_3 = arith.constant 0 : index
    %c0_4 = arith.constant 0 : index
    %4 = vector.load %arg2[%c0_2, %c0_3, %c0_4] : memref<2x16x128xf32, #tpu.memory_space<vmem>>, vector<2x16x128xf32>
    %cst = arith.constant dense<0.000000e+00> : vector<2x16xf32>
    %5 = vector.multi_reduction <add>, %4, %cst [2] : vector<2x16x128xf32> to vector<2x16xf32>
    %6 = arith.addf %3, %5 : vector<2x16xf32>
    %c0_5 = arith.constant 0 : index
    %c0_6 = arith.constant 0 : index
    %7 = vector.load %arg8[%c0_5, %c0_6] : memref<2x16xf32, #tpu.memory_space<vmem>>, vector<2x16xf32>
    tpu.vector_store %arg8[%c0_5, %c0_6], %6 {strides = array<i32>} : memref<2x16xf32, #tpu.memory_space<vmem>>, vector<2x16xf32>,
    %c1_i32 = arith.constant 1 : i32
    %8 = arith.cmpi eq, %arg1, %c1_i32 : i32
    %9 = arith.extui %8 : i1 to i32
    %c0_i32_7 = arith.constant 0 : i32
    %10 = arith.cmpi ne, %9, %c0_i32_7 : i32
    scf.if %10 {
      %c0_8 = arith.constant 0 : index
      %c0_9 = arith.constant 0 : index
      %11 = vector.load %arg8[%c0_8, %c0_9] : memref<2x16xf32, #tpu.memory_space<vmem>>, vector<2x16xf32>
      %cst_10 = arith.constant 3.906250e-03 : f32
      %12 = vector.broadcast %cst_10 : f32 to vector<2x16xf32>
      %13 = arith.mulf %11, %12 : vector<2x16xf32>
      %c0_11 = arith.constant 0 : index
      %c0_12 = arith.constant 0 : index
      %14 = vector.load %arg3[%c0_11, %c0_12] : memref<16x2xf32, #tpu.memory_space<vmem>>, vector<16x2xf32>
      %cst_13 = arith.constant dense<0.000000e+00> : vector<2x2xf32>
      %15 = tpu.matmul %13, %14, %cst_13 {dimension_numbers = #tpu.dot_dimension_numbers<[1], [0], [0], [1], [0, 0, 1, 1], [], []>} : vector<2x16xf32>, vector<16x2xf32>, vector<2x2xf32> -> vector<2x2xf32>
      %c0_14 = arith.constant 0 : index
      %c0_15 = arith.constant 0 : index
      %16 = vector.load %arg4[%c0_14, %c0_15] : memref<1x2xf32, #tpu.memory_space<vmem>>, vector<1x2xf32>
      %17 = vector.broadcast %16 : vector<1x2xf32> to vector<2x2xf32>
      %18 = arith.addf %15, %17 : vector<2x2xf32>
      %cst_16 = arith.constant 0.000000e+00 : f32
      %19 = vector.broadcast %cst_16 : f32 to vector<2x2xf32>
      %20 = arith.maximumf %18, %19 : vector<2x2xf32>
      %c0_17 = arith.constant 0 : index
      %c0_18 = arith.constant 0 : index
      %21 = vector.load %arg5[%c0_17, %c0_18] : memref<2x16xf32, #tpu.memory_space<vmem>>, vector<2x16xf32>
      %cst_19 = arith.constant dense<0.000000e+00> : vector<2x16xf32>
      %22 = tpu.matmul %20, %21, %cst_19 {dimension_numbers = #tpu.dot_dimension_numbers<[1], [0], [0], [1], [0, 0, 1, 1], [], []>} : vector<2x2xf32>, vector<2x16xf32>, vector<2x16xf32> -> vector<2x16xf32>
      %c0_20 = arith.constant 0 : index
      %c0_21 = arith.constant 0 : index
      %23 = vector.load %arg6[%c0_20, %c0_21] : memref<1x16xf32, #tpu.memory_space<vmem>>, vector<1x16xf32>
      %24 = vector.broadcast %23 : vector<1x16xf32> to vector<2x16xf32>
      %25 = arith.addf %22, %24 : vector<2x16xf32>
      %26 = arith.negf %25 : vector<2x16xf32>
      %27 = math.exp %26 : vector<2x16xf32>
      %cst_22 = arith.constant 1.000000e+00 : f32
      %28 = vector.broadcast %cst_22 : f32 to vector<2x16xf32>
      %29 = arith.addf %28, %27 : vector<2x16xf32>
      %30 = arith.divf %28, %29 : vector<2x16xf32>
      %c0_23 = arith.constant 0 : index
      %c0_24 = arith.constant 0 : index
      %31 = vector.load %arg7[%c0_23, %c0_24] : memref<2x16xf32, #tpu.memory_space<vmem>>, vector<2x16xf32>
      tpu.vector_store %arg7[%c0_23, %c0_24], %30 {strides = array<i32>} : memref<2x16xf32, #tpu.memory_space<vmem>>, vector<2x16xf32>,
    } else {
    }
    return
  }
  func.func @transform_0(%arg0: i32, %arg1: i32) -> (i32, i32, i32) {
    %c0_i32 = arith.constant 0 : i32
    %c0_i32_0 = arith.constant 0 : i32
    return %arg0, %c0_i32, %arg1 : i32, i32, i32
  }
  func.func @transform_1(%arg0: i32, %arg1: i32) -> (i32, i32) {
    %c0_i32 = arith.constant 0 : i32
    %c0_i32_0 = arith.constant 0 : i32
    %c0_i32_1 = arith.constant 0 : i32
    return %c0_i32, %c0_i32_0 : i32, i32
  }
  func.func @transform_2(%arg0: i32, %arg1: i32) -> (i32, i32) {
    %c0_i32 = arith.constant 0 : i32
    %c0_i32_0 = arith.constant 0 : i32
    %c0_i32_1 = arith.constant 0 : i32
    return %c0_i32, %c0_i32_0 : i32, i32
  }
  func.func @transform_3(%arg0: i32, %arg1: i32) -> (i32, i32) {
    %c0_i32 = arith.constant 0 : i32
    %c0_i32_0 = arith.constant 0 : i32
    %c0_i32_1 = arith.constant 0 : i32
    return %c0_i32, %c0_i32_0 : i32, i32
  }
  func.func @transform_4(%arg0: i32, %arg1: i32) -> (i32, i32) {
    %c0_i32 = arith.constant 0 : i32
    %c0_i32_0 = arith.constant 0 : i32
    %c0_i32_1 = arith.constant 0 : i32
    return %c0_i32, %c0_i32_0 : i32, i32
  }
  func.func @transform_5(%arg0: i32, %arg1: i32) -> (i32, i32) {
    %c0_i32 = arith.constant 0 : i32
    %c0_i32_0 = arith.constant 0 : i32
    return %arg0, %c0_i32 : i32, i32
  }
}

</mosaic_0001>

<bundles_post_ra>
// kernel: tpu_custom_call.1
= control target key start
LH: loop header
LB: loop body
LE: loop exit
PB: predicated region body
PF: predicated region fallthrough
CT: control target
= control target key end

     0   :  { %10 = vsyncpa [#allocation4], 0  ;;  %s944_s0 = inlined_call_operand.hbm [shape: f32[2,16,256], index: 0, kind: input, shape index: {}]   ;;  %s945_s1 = inlined_call_operand.vmem [shape: f32[16,2], index: 1, kind: input, shape index: {}]   ;;  %s946_s2 = inlined_call_operand.vmem [shape: f32[1,2], index: 2, kind: input, shape index: {}]   ;;  %s947_s3 = inlined_call_operand.vmem [shape: f32[2,16], index: 3, kind: input, shape index: {}]   ;;  %s948_s4 = inlined_call_operand.vmem [shape: f32[1,16], index: 4, kind: input, shape index: {}]   ;;  %s949_s5 = inlined_call_operand.hbm [shape: f32[2,16], index: 5, kind: output, shape index: {}]  }
   0x1   :  { %12 = vsyncpa [#allocation4 + $0x1], 0 }
   0x2   :  { %13 = vsyncpa [#allocation5], 0  ;;  %s813_s18 = smov 0   ;;  %s815_s19 = smov 0  }
   0x3   :  { %s817_s20 = smov 0   ;;  %s819_s21 = smov 0  }
   0x4   :  { %s821_s22 = smov 0   ;;  %s823_s23 = smov 0  }
   0x5 LB: > { %s559_s24 = sadd.s32 4294967295, %s773_s23   ;;  %s28_s25 = sadd.s32 1, %s769_s22  ;;  %s773_s23 = sphi %s823_s23, %s19_s23   ;;  %s769_s22 = sphi %s821_s22, %s958_s22   ;;  %s765_s21 = sphi %s819_s21, %s957_s21   ;;  %s761_s20 = sphi %s817_s20, %s956_s20   ;;  %s757_s19 = sphi %s815_s19, %s955_s19   ;;  %s753_s18 = sphi %s813_s18, %s954_s18  }
   0x6   : > { %p29_p0 = scmp.ge.s32.totalorder %s28_s25, 2  ;;  %s40_s26 = sadd.s32 1, %s761_s20 }
   0x7   : > { %p47_p1 = scmp.ne.s32.totalorder %s761_s20, %s757_s19  ;;  %p48_p2 = scmp.eq.s32.totalorder %s773_s23, 0 }
   0x8   : > { %s960_s25 = smov (%p29_p0, %s28_s25), 0  ;;  %p53_p4 = scmp.ne.s32.totalorder %s757_s19, %s753_s18 }
   0x9   : > { %p849_p3 = por %p48_p2, %p47_p1  ;;  %s36_s28 = ssub.s32 %s769_s22, %s960_s25 }
   0xa   : > { %p54_p5 = scmp.eq.s32.totalorder %s559_s24, 0  ;;  %p38_p6 = scmp.eq.s32.totalorder %s36_s28, 0 }
   0xb   : > { %p605_p8 = scmp.lt.s32.totalorder %s773_s23, 2  ;;  %s199_s6 = sand.u32 1, %s761_s20  }
   0xc   : > { %p858_p7 = por %p54_p5, %p53_p4  ;;  %s563_s7 = sshll.u32 %s769_s22, 7 }
   0xd   : > { %s864_s30 = scalar_select %p38_p6, %s761_s20, %s40_s26  }
   0xe   : > { %s562_s8 = sshll.u32 %s199_s6, 5  ;;  %s211_s11 = scalar_lea.hbm %s944_s0, %s563_s7 }
   0xf   : > { %s203_s12 = scalar_lea.vmem [#allocation3], %s562_s8  ;;  %p873_p9 = pnand %p605_p8, %p849_p3 }
  0x10   : > { %s212_s13 = sshll.u32 %s203_s12, 4  ;;  %p564_p10 = scmp.ge.s32.totalorder %s773_s23, 1  ;;  %s213_s13 = int_to_ptr.vmem [resolvable:$true] %s212_s13 }
  0x11   : > { %s200_s15 = scalar_lea.sflag [#allocation4], %s199_s6  ;;  %p669_p11 = pneg %p873_p9 }
  0x12   : > { %s680_s16 = scalar_lea.vmem %s213_s13, 512  ;;  %s775_s17 = smov [#allocation3]  }
  0x13   : > { %p681_p12 = scmp.ne.s32.totalorder %s213_s13, %s680_s16  ;;  %s685_s18 = sshll.u32 %s775_s17, 4  ;;  %s686_s18 = int_to_ptr.vmem [resolvable:$false] %s685_s18 }
  0x14   : > { %s687_s26 = scalar_lea.vmem %s686_s18, 1024  ;;  %p688_p1 = scmp.lt.s32.totalorder %s213_s13, %s686_s18 }
  0x15   : > { %p683_p13 = pnand %p681_p12, %p669_p11  ;;  %p689_p2 = scmp.lt.s32.totalorder %s687_s26, %s680_s16 }
  0x17   : > { %p684_p0 = pneg %p683_p13  ;;  %p690_p3 = por %p689_p2, %p688_p1 }
  0x19   : > { %p691_p4 = pnand %p690_p3, %p684_p0 }
  0x1b   : > { %694 = shalt.err (!%p691_p4)
}
  0x1c   : > { %s776_s27 = smov 256   ;;  %s777_s28 = smov 128  }
  0x1d   : > { %s778_s6 = smov 8   ;;  %p220_p5 = scmp.lt.s32.totalorder %s773_s23, 3 }
  0x1e   : > { %604 = dma.hbm_to_vmem [thread:$0]  (!%p873_p9), %s211_s11, 512, %s213_s13, %s200_s15, %s776_s27, %s777_s28, %s778_s6  }
  0x1f   : > { %p221_p6 = pnand %p564_p10, %p220_p5 }
  0x20   : > { %s226_s7 = sand.u32 (!%p221_p6), 1, %s757_s19  }
  0x21   : > { %224 = sbr.rel (%p221_p6) target bundleno = 647 (0x287), region = 40  ;;  %s565_s8 = sshll.u32 (!%p221_p6), %s226_s7, 5 }
  0x22   : > { %s227_s9 = scalar_lea.sflag (!%p221_p6), [#allocation4], %s226_s7  ;;  %s230_s10 = scalar_lea.vmem (!%p221_p6), [#allocation3], %s565_s8 }
  0x26   : > { %744 = dma.done.wait (%p858_p7), %s227_s9, 512  }
  0x27   : > { %746 = vsyncadd (%p858_p7), %s227_s9, 4294966784  ;;  %p566_p8 = scmp.ne.s32.totalorder %s765_s21, 0 }
  0x29   : > { %256 = sbr.rel (%p566_p8) target bundleno = 48 (0x30), region = 48 }
  0x2e   : > { %vm257_vm0 = vcmask 123904   ;;  %v779_v0 = vmov 0.0  }
  0x2f   : > { %258 = vst.msk [vmem:[#allocation2] sm:$0x3] %vm257_vm0, %v779_v0 }
  0x30 PF: > { %v262_v1 = vld [vmem:[%s230_s10 + $0x10] sm:$0xff]  ;;  %v260_v2 = vld [vmem:[%s230_s10] sm:$0xff]  ;;  %v263_v3 = vld [vmem:[%s230_s10 + $0x18] sm:$0xff]  ;;  %v276_v5 = vlaneseq  ;;  %vm287_vm1 = vcmask 130112   ;;  %vm298_vm2 = vcmask 1041409   ;;  %vm302_vm3 = vcmask 123904  }
  0x31   : > { %268 = vadd.xlane.f32.xlu1 %v262_v1  ;;  %264 = vadd.xlane.f32.xlu0 %v260_v2  ;;  %v261_v4 = vld [vmem:[%s230_s10 + $0x8] sm:$0xff]  ;;  %p567_p7 = scmp.ne.s32.totalorder %s765_s21, 1 }
  0x32   : > { %v277_v6 = vand.u32 127, %v276_v5  ;;  %v279_v7 = vshrl.u32 %v276_v5, 7 }
  0x34   : > { %v282_v8 = vadd.s32 4294967288, %v277_v6  ;;  %v280_v11 = vsub.s32 %v277_v6, %v279_v7 }
  0x35   : > { %270 = vadd.xlane.f32.xlu1 %v263_v3  ;;  %266 = vadd.xlane.f32.xlu0 %v261_v4 }
  0x36   : > { %v285_v12 = vsub.s32 %v282_v8, %v279_v7  ;;  %v259_v19 = vld [vmem:[#allocation2] sm:$0x3] }
  0xba   : > { %v269_v9 = vpop.xlane.xlu1 %268  ;;  %v265_v10 = vpop.xlane.xlu0 %264 }
  0xbb   : > { %v292_v15 = vrot.slane %v269_v9, %v280_v11  ;;  %v281_v16 = vrot.slane %v265_v10, %v280_v11 }
  0xbe   : > { %v271_v13 = vpop.xlane.xlu1 %270  ;;  %v267_v14 = vpop.xlane.xlu0 %266 }
  0xbf   : > { %v296_v17 = vrot.slane %v271_v13, %v285_v12  ;;  %v286_v18 = vrot.slane %v267_v14, %v285_v12 }
  0xc1   : > { %v297_v20 = vsel %vm287_vm1, %v296_v17, %v292_v15  ;;  %v288_v21 = vsel %vm287_vm1, %v286_v18, %v281_v16  ;;  %307 = sbr.rel (%p567_p7) target bundleno = 632 (0x278), region = 52 }
  0xc2   : > { %v299_v22 = vsel %vm298_vm2, %v297_v20, %v288_v21 }
  0xc3   : > { %v301_v23 = vadd.f32 %v299_v22, %v259_v19 }
  0xc5   : > { %303 = vst.msk [vmem:[#allocation2] sm:$0x3] %vm302_vm3, %v301_v23 }
  0xc6   : > { %v311_v24 = vld [vmem:[%s945_s1 + $0x8] sm:$0xff]  ;;  %v780_v26 = vmov 0.0   ;;  %v310_v27 = vld [vmem:[%s945_s1] sm:$0xff]  ;;  %vm781_vm4 = vmmov 0   ;;  %vm319_vm5 = vcmask 130048   ;;  %vm406_vm6 = vcmask 1041408  }
  0xc7   : > { %583 = vmatprep.subr.mxu0 %v780_v26  ;;  %587 = vmatprep.mubr.msk.f32.mxu0 %vm781_vm4, %v780_v26  ;;  %v394_v29 = vld [vmem:[%s947_s3] sm:$0x3]  ;;  %vm402_vm7 = vcmask 15360  }
  0xc8   : > { %584 = vmatpush3.msra.mxu0 %v311_v24  ;;  %590 = vmatprep.subr.mxu1 %v780_v26  ;;  %v568_v30 = vld [vmem:[%s946_s2] ss:$0 sm:$0xff] }
  0xc9   : > { %585 = vmatprep.subr.mxu0 %v780_v26  ;;  %592 = vmatprep.mubr.msk.f32.mxu1 %vm781_vm4, %v780_v26  ;;  %v570_v35 = vld [vmem:[%s948_s4] ss:$0 sm:$0xff] }
  0xca   : > { %586 = vmatpush3.msra.mxu0 %v310_v27  ;;  %591 = vmatpush3.msk.msra.mxu1 %vm406_vm6, %v394_v29 }
  0xcc   : > { %v308_v25 = vld [vmem:[#allocation2] sm:$0x3] }
  0xcd   : > { %v309_v28 = vmul.f32 0.00390625, %v308_v25 }
  0xcf   : > { %588 = vmatmul.mubr.msk.f32.vlgmr.msra.gmra.mxu0 %vm319_vm5, %v309_v28 }
 0x18f   : > { %v389_v31 = vpop.f32.mrf.mxu0 }
 0x190   : > { %v390_v32 = vadd.f32 %v568_v30, %v389_v31 }
 0x191   : > { %v589_v33 = vpop.f32.mrf.mxu0 }
 0x192   : > { %v393_v34 = vmax.f32 %v390_v32, 0.0 }
 0x194   : > { %593 = vmatmul.mubr.msk.f32.vlgmr.msra.gmra.mxu1 %vm402_vm7, %v393_v34 }
 0x254   : > { %v476_v36 = vpop.f32.mrf.mxu1 }
 0x255   : > { %v477_v37 = vadd.f32 %v570_v35, %v476_v36 }
 0x256   : > { %v594_v38 = vpop.f32.mrf.mxu1 }
 0x257   : > { %v573_v39 = vmul.f32 -1.442695, %v477_v37 }
 0x259   : > { %663 = vpow2.f32 %v573_v39 }
 0x266   : > { %v664_v40 = vpop.eup %663 }
 0x267   : > { %v483_v41 = vadd.f32 1.0, %v664_v40 }
 0x269   : > { %665 = vrcp.f32 %v483_v41 }
 0x276   : > { %v666_v42 = vpop.eup %665 }
 0x277   : > { %486 = vst.msk [vmem:[#allocation6] sm:$0x3] %vm302_vm3, %v666_v42 }
 0x278 PF: > { %p911_p9 = scmp.eq.s32.totalorder %s559_s24, 1  ;;  %s782_s27 = smov [#allocation6]  }
 0x279   : > { %s496_s28 = sshll.u32 %s782_s27, 4  ;;  %s497_s28 = int_to_ptr.vmem [resolvable:$true] %s496_s28 }
 0x27a   : > { %s695_s6 = scalar_lea.vmem %s497_s28, 32  ;;  %p702_p13 = scmp.lt.s32.totalorder %s497_s28, %s497_s28 }
 0x27b   : > { %p696_p10 = scmp.ne.s32.totalorder %s497_s28, %s695_s6  ;;  %p703_p0 = scmp.lt.s32.totalorder %s695_s6, %s695_s6 }
 0x27d   : > { %p697_p11 = pnand %p696_p10, %p911_p9  ;;  %p704_p1 = por %p703_p0, %p702_p13 }
 0x27f   : > { %p698_p12 = pneg %p697_p11 }
 0x281   : > { %p705_p2 = pnand %p704_p1, %p698_p12 }
 0x283   : > { %708 = shalt.err (!%p705_p2)
}
 0x284   : > { %598 = dma.vmem_to_hbm [thread:$0]  (%p911_p9), %s497_s28, 32, %s949_s5, [#allocation5]  }
 0x285   : > { %748 = dma.done.wait (%p911_p9), [#allocation5], 32  }
 0x286   : > { %750 = vsyncadd (%p911_p9), [#allocation5], 4294967264 }
 0x287 PF: > { %s19_s23 = sadd.s32 1, %s773_s23   ;;  %s954_s18 = smov %s757_s19 }
 0x288   : > { %p16_p3 = scmp.ge.s32.totalorder %s19_s23, 4   ;;  %s955_s19 = smov %s761_s20 }
 0x289   : > { %s956_s20 = smov %s864_s30  ;;  %s957_s21 = smov %s769_s22 }
 0x28a   : > { %s958_s22 = smov %s960_s25  ;;  %18 = sbr.rel (!%p16_p3) target bundleno = 5 (0x5), region = 86 }
 0x28f   :  { %509 = vsyncpa [#allocation4], 1 }
 0x290   :  { %511 = vsyncpa [#allocation4 + $0x1], 1 }
 0x291   :  { %512 = vsyncpa [#allocation5], 1 }
 0x292   :  { %514 = vsyncpa [#allocation5 + $0x1], 1 }

</bundles_post_ra>
